<compile_context>
chip_gen: v6e
topology: v6e:2x2x1
jax: 0.10.0
libtpu: 0.0.40
codegen_flags: <defaults>
</compile_context>

<pallas_src>
import functools

import jax
import jax.numpy as jnp
from jax.experimental import pallas as pl
from jax.experimental.pallas import tpu as pltpu

BN_EPS = 1e-5

# Tile sizes: multiples of 256 keep the 256-wide MXU (v6e/v7x) full and satisfy
# the (8,128) layout constraint; they are small enough to double-buffer well
# inside v7x's 64 MiB VMEM and v5e's 16 MiB default scoped limit.
TILE_M = 256   # rows of adj / rows of the output per grid step
TILE_K = 256   # cols of adj (= rows of XW) per reduction step
TILE_D = 256   # Din reduction tile for the X @ W pre-pass


def _round_up(x, m):
    return ((x + m - 1) // m) * m


def _pad2d(a, rows, cols):
    return jnp.pad(a, ((0, rows - a.shape[0]), (0, cols - a.shape[1])))


# --------------------------------------------------------------------------
# Phase 1: XW = X @ W   (O(N * Dout), computed once)
# --------------------------------------------------------------------------
def xw_kernel(x_ref, w_ref, xw_ref, acc_ref):
    k = pl.program_id(1)

    @pl.when(k == 0)
    def _():
        acc_ref[...] = jnp.zeros_like(acc_ref)

    acc_ref[...] += jnp.dot(x_ref[...], w_ref[...],
                            preferred_element_type=jnp.float32)

    @pl.when(k == pl.num_programs(1) - 1)
    def _():
        xw_ref[...] = acc_ref[...].astype(xw_ref.dtype)


# --------------------------------------------------------------------------
# Phase 2: H = A_norm @ XW, then fused (bias+BN) scale/shift, ReLU, residual
# --------------------------------------------------------------------------
def agg_kernel(adj_ref, xw_ref, xres_ref, scale_ref, shift_ref, o_ref,
               acc_ref, *, add_residual):
    k = pl.program_id(1)

    @pl.when(k == 0)
    def _():
        acc_ref[...] = jnp.zeros_like(acc_ref)

    acc_ref[...] += jnp.dot(adj_ref[...], xw_ref[...],
                            preferred_element_type=jnp.float32)

    @pl.when(k == pl.num_programs(1) - 1)
    def _():
        # bias + eval-mode BatchNorm folded into one scale/shift pair (VPU)
        h = acc_ref[...] * scale_ref[...] + shift_ref[...]
        h = jnp.maximum(h, 0.0)                      # ReLU
        if add_residual:                             # residual (in_dim == out_dim)
            h = h + xres_ref[...]
        # TODO(synk): dropout is identity in eval mode; training dropout would
        # use pltpu.prng_seed + pltpu.stateful_bernoulli here.
        o_ref[...] = h


# --------------------------------------------------------------------------
# JAX glue
# --------------------------------------------------------------------------
def build_norm_adj(edge_index, num_nodes):
    """Dense GCN-normalized adjacency D^{-1/2}(A + I)D^{-1/2} (multi-edges counted)."""
    src = edge_index[0]
    dst = edge_index[1]
    a = jnp.zeros((num_nodes, num_nodes), jnp.float32)
    a = a.at[dst, src].add(1.0)                            # count duplicates (PyG-like)
    a = a + jnp.eye(num_nodes, dtype=jnp.float32)          # self loops
    deg = a.sum(axis=1)                                    # >= 1 because of self loops
    d_inv_sqrt = jax.lax.rsqrt(deg)
    return d_inv_sqrt[:, None] * a * d_inv_sqrt[None, :]


def gcn_layer_forward(feature, edge_index, params, *, residual=True):
    n, din = feature.shape
    dout = params["w"].shape[1]
    add_residual = bool(residual) and (din == dout)        # module disables otherwise

    adj = build_norm_adj(edge_index, n)

    # Fold GCNConv bias + eval-mode BatchNorm1d into a single scale/shift pair:
    #   out = (conv + b - mean) * gamma/sqrt(var+eps) + beta
    eff_scale = params["gamma"] * jax.lax.rsqrt(params["running_var"] + BN_EPS)
    eff_shift = params["beta"] + (params["b"] - params["running_mean"]) * eff_scale

    # Pad to lane-dense, tile-aligned shapes.
    n_pad = _round_up(n, max(TILE_M, TILE_K))
    din_pad = _round_up(din, TILE_D)
    dout_pad = _round_up(dout, 128)

    adj_p = _pad2d(adj, n_pad, n_pad).astype(jnp.bfloat16)
    x_p = _pad2d(feature, n_pad, din_pad).astype(jnp.bfloat16)
    w_p = _pad2d(params["w"], din_pad, dout_pad).astype(jnp.bfloat16)
    if add_residual:
        xres_p = _pad2d(feature.astype(jnp.float32), n_pad, dout_pad)
    else:
        xres_p = jnp.zeros((n_pad, dout_pad), jnp.float32)
    scale_p = jnp.pad(eff_scale, (0, dout_pad - dout)).reshape(1, dout_pad)
    shift_p = jnp.pad(eff_shift, (0, dout_pad - dout)).reshape(1, dout_pad)

    # ---- phase 1: XW = X @ W -------------------------------------------
    xw = pl.pallas_call(
        xw_kernel,
        out_shape=jax.ShapeDtypeStruct((n_pad, dout_pad), jnp.bfloat16),
        grid_spec=pltpu.PrefetchScalarGridSpec(
            num_scalar_prefetch=0,
            grid=(n_pad // TILE_M, din_pad // TILE_D),
            in_specs=[
                pl.BlockSpec((TILE_M, TILE_D), lambda i, k: (i, k)),      # X
                pl.BlockSpec((TILE_D, dout_pad), lambda i, k: (k, 0)),    # W
            ],
            out_specs=pl.BlockSpec((TILE_M, dout_pad), lambda i, k: (i, 0)),
            scratch_shapes=[pltpu.VMEM((TILE_M, dout_pad), jnp.float32)],
        ),
        compiler_params=pltpu.CompilerParams(
            dimension_semantics=("parallel", "arbitrary")),
    )(x_p, w_p)

    # ---- phase 2: A_norm @ XW + fused epilogue ---------------------------
    kernel = functools.partial(agg_kernel, add_residual=add_residual)
    out_p = pl.pallas_call(
        kernel,
        out_shape=jax.ShapeDtypeStruct((n_pad, dout_pad), jnp.float32),
        grid_spec=pltpu.PrefetchScalarGridSpec(
            num_scalar_prefetch=0,
            grid=(n_pad // TILE_M, n_pad // TILE_K),
            in_specs=[
                pl.BlockSpec((TILE_M, TILE_K), lambda i, k: (i, k)),      # adj tile
                pl.BlockSpec((TILE_K, dout_pad), lambda i, k: (k, 0)),    # XW tile
                pl.BlockSpec((TILE_M, dout_pad), lambda i, k: (i, 0)),    # residual rows
                pl.BlockSpec((1, dout_pad), lambda i, k: (0, 0)),         # eff scale
                pl.BlockSpec((1, dout_pad), lambda i, k: (0, 0)),         # eff shift
            ],
            out_specs=pl.BlockSpec((TILE_M, dout_pad), lambda i, k: (i, 0)),
            scratch_shapes=[pltpu.VMEM((TILE_M, dout_pad), jnp.float32)],
        ),
        compiler_params=pltpu.CompilerParams(
            dimension_semantics=("parallel", "arbitrary")),
    )(adj_p, xw, xres_p, scale_p, shift_p)

    return out_p[:n, :dout]


def gcn_layer_reference(feature, edge_index, params, *, residual=True):
    """Pure-JAX f32 reference with the same semantics (eval-mode BN, identity dropout)."""
    n, din = feature.shape
    dout = params["w"].shape[1]
    adj = build_norm_adj(edge_index, n)
    h = adj @ (feature @ params["w"]) + params["b"][None, :]
    scale = params["gamma"] * jax.lax.rsqrt(params["running_var"] + BN_EPS)
    h = (h - params["running_mean"][None, :]) * scale[None, :] + params["beta"][None, :]
    h = jnp.maximum(h, 0.0)
    if residual and din == dout:
        h = h + feature
    return h


def make_params(key, in_dim, out_dim):
    k_w, k_b, k_g, k_be, k_m, k_v = jax.random.split(key, 6)
    w = jax.random.normal(k_w, (in_dim, out_dim), jnp.float32) * (1.0 / jnp.sqrt(in_dim))
    b = jax.random.normal(k_b, (out_dim,), jnp.float32) * 0.1
    gamma = 1.0 + 0.1 * jax.random.normal(k_g, (out_dim,), jnp.float32)
    beta = 0.1 * jax.random.normal(k_be, (out_dim,), jnp.float32)
    running_mean = 0.05 * jax.random.normal(k_m, (out_dim,), jnp.float32)
    running_var = 1.0 + 0.1 * jax.random.uniform(k_v, (out_dim,), jnp.float32)
    return {"w": w, "b": b, "gamma": gamma, "beta": beta,
            "running_mean": running_mean, "running_var": running_var}


if __name__ == "__main__":
    key = jax.random.PRNGKey(0)
    k_feat, k_edge, k_params = jax.random.split(key, 3)

    N = 16          # number of graph nodes
    IN_DIM = 32     # in_dim == out_dim so the residual path is active
    OUT_DIM = 32
    NUM_EDGES = 40

    feature = jax.random.normal(k_feat, (N, IN_DIM), jnp.float32)

    src = jax.random.randint(k_edge, (NUM_EDGES,), 0, N)
    dst = jax.random.randint(jax.random.fold_in(k_edge, 1), (NUM_EDGES,), 0, N)
    edge_index = jnp.stack([jnp.concatenate([src, dst]),
                            jnp.concatenate([dst, src])], axis=0).astype(jnp.int32)

    params = make_params(k_params, IN_DIM, OUT_DIM)

    out = gcn_layer_forward(feature, edge_index, params, residual=True)
    jax.block_until_ready(out)

    assert out.shape == (N, OUT_DIM)
    assert jnp.all(jnp.isfinite(out))

    ref = gcn_layer_reference(feature, edge_index, params, residual=True)
    max_err = float(jnp.max(jnp.abs(out - ref)))
    # bf16 MXU inputs -> loose tolerance
    assert max_err < 0.1, f"kernel vs reference mismatch: max|diff| = {max_err}"

    print("KERNEL_OK")
</pallas_src>

<mosaic_0001>
module attributes {stable_mosaic.version = 11 : i64} {
  func.func @xw_kernel(%arg0: i32, %arg1: i32, %arg2: memref<256x256xbf16, #tpu.memory_space<vmem>>, %arg3: memref<256x128xbf16, #tpu.memory_space<vmem>>, %arg4: memref<256x128xbf16, #tpu.memory_space<vmem>>, %arg5: memref<256x128xf32, #tpu.memory_space<vmem>>) attributes {dimension_semantics = [#tpu.dimension_semantics<parallel>, #tpu.dimension_semantics<arbitrary>], iteration_bounds = array<i64: 1, 1>, scalar_prefetch = 0 : i64, scratch_operands = 1 : i64, tpu.core_type = #tpu.core_type<tc>, window_params = [{transform_indices = @transform_0, window_bounds = array<i64: 256, 256>}, {transform_indices = @transform_1, window_bounds = array<i64: 256, 128>}, {transform_indices = @transform_2, window_bounds = array<i64: 256, 128>}]} {
    %c0_i32 = arith.constant 0 : i32
    %0 = arith.cmpi eq, %arg1, %c0_i32 : i32
    %1 = arith.extui %0 : i1 to i32
    %c0_i32_0 = arith.constant 0 : i32
    %2 = arith.cmpi ne, %1, %c0_i32_0 : i32
    scf.if %2 {
      %cst_10 = arith.constant 0.000000e+00 : f32
      %12 = vector.broadcast %cst_10 : f32 to vector<256x128xf32>
      %c0_11 = arith.constant 0 : index
      %c0_12 = arith.constant 0 : index
      %13 = vector.load %arg5[%c0_11, %c0_12] : memref<256x128xf32, #tpu.memory_space<vmem>>, vector<256x128xf32>
      tpu.vector_store %arg5[%c0_11, %c0_12], %12 {strides = array<i32>} : memref<256x128xf32, #tpu.memory_space<vmem>>, vector<256x128xf32>,
    } else {
    }
    %c0 = arith.constant 0 : index
    %c0_1 = arith.constant 0 : index
    %3 = vector.load %arg5[%c0, %c0_1] : memref<256x128xf32, #tpu.memory_space<vmem>>, vector<256x128xf32>
    %c0_2 = arith.constant 0 : index
    %c0_3 = arith.constant 0 : index
    %4 = vector.load %arg2[%c0_2, %c0_3] : memref<256x256xbf16, #tpu.memory_space<vmem>>, vector<256x256xbf16>
    %c0_4 = arith.constant 0 : index
    %c0_5 = arith.constant 0 : index
    %5 = vector.load %arg3[%c0_4, %c0_5] : memref<256x128xbf16, #tpu.memory_space<vmem>>, vector<256x128xbf16>
    %cst = arith.constant dense<0.000000e+00> : vector<256x128xf32>
    %6 = tpu.matmul %4, %5, %cst {dimension_numbers = #tpu.dot_dimension_numbers<[1], [0], [0], [1], [0, 0, 1, 1], [], []>} : vector<256x256xbf16>, vector<256x128xbf16>, vector<256x128xf32> -> vector<256x128xf32>
    %7 = arith.addf %3, %6 : vector<256x128xf32>
    %c0_6 = arith.constant 0 : index
    %c0_7 = arith.constant 0 : index
    %8 = vector.load %arg5[%c0_6, %c0_7] : memref<256x128xf32, #tpu.memory_space<vmem>>, vector<256x128xf32>
    tpu.vector_store %arg5[%c0_6, %c0_7], %7 {strides = array<i32>} : memref<256x128xf32, #tpu.memory_space<vmem>>, vector<256x128xf32>,
    %c0_i32_8 = arith.constant 0 : i32
    %9 = arith.cmpi eq, %arg1, %c0_i32_8 : i32
    %10 = arith.extui %9 : i1 to i32
    %c0_i32_9 = arith.constant 0 : i32
    %11 = arith.cmpi ne, %10, %c0_i32_9 : i32
    scf.if %11 {
      %c0_10 = arith.constant 0 : index
      %c0_11 = arith.constant 0 : index
      %12 = vector.load %arg5[%c0_10, %c0_11] : memref<256x128xf32, #tpu.memory_space<vmem>>, vector<256x128xf32>
      %13 = arith.truncf %12 : vector<256x128xf32> to vector<256x128xbf16>
      %c0_12 = arith.constant 0 : index
      %c0_13 = arith.constant 0 : index
      %14 = vector.load %arg4[%c0_12, %c0_13] : memref<256x128xbf16, #tpu.memory_space<vmem>>, vector<256x128xbf16>
      tpu.vector_store %arg4[%c0_12, %c0_13], %13 {strides = array<i32>} : memref<256x128xbf16, #tpu.memory_space<vmem>>, vector<256x128xbf16>,
    } else {
    }
    return
  }
  func.func @transform_0(%arg0: i32, %arg1: i32) -> (i32, i32) {
    %c0_i32 = arith.constant 0 : i32
    return %arg0, %arg1 : i32, i32
  }
  func.func @transform_1(%arg0: i32, %arg1: i32) -> (i32, i32) {
    %c0_i32 = arith.constant 0 : i32
    %c0_i32_0 = arith.constant 0 : i32
    return %arg1, %c0_i32 : i32, i32
  }
  func.func @transform_2(%arg0: i32, %arg1: i32) -> (i32, i32) {
    %c0_i32 = arith.constant 0 : i32
    %c0_i32_0 = arith.constant 0 : i32
    return %arg0, %c0_i32 : i32, i32
  }
}

</mosaic_0001>

<bundles_post_ra>
// kernel: tpu_custom_call.1
= control target key start
LH: loop header
LB: loop body
LE: loop exit
PB: predicated region body
PF: predicated region fallthrough
CT: control target
= control target key end

     0   :  { %7 = vsyncpa [#allocation4], 0  ;;  %s1376_s0 = inlined_call_operand.hbm [shape: bf16[256,256], index: 0, kind: input, shape index: {}]   ;;  %s1377_s1 = inlined_call_operand.hbm [shape: bf16[256,128], index: 1, kind: input, shape index: {}]   ;;  %s1378_s2 = inlined_call_operand.hbm [shape: bf16[256,128], index: 2, kind: output, shape index: {}]  }
   0x1   :  { %8 = vsyncpa [#allocation7], 0 }
   0x2   :  { %9 = vsyncpa [#allocation5], 0  ;;  %s1339_s9 = smov [#allocation3]  }
   0x3   :  { %s15_s10 = sshll.u32 %s1339_s9, 4  ;;  %s16_s10 = int_to_ptr.vmem [resolvable:$true] %s15_s10 }
   0x4   :  { %s1281_s11 = scalar_lea.vmem %s16_s10, 4096  ;;  %p1286_p1 = scmp.lt.s32.totalorder %s16_s10, %s16_s10 }
   0x5   :  { %p1282_p0 = scmp.ne.s32.totalorder %s16_s10, %s1281_s11  ;;  %p1287_p2 = scmp.lt.s32.totalorder %s1281_s11, %s1281_s11 }
   0x7   :  { %p1288_p3 = por %p1287_p2, %p1286_p1 }
   0x9   :  { %p1289_p4 = pnand %p1288_p3, %p1282_p0 }
   0xb   :  { %1292 = shalt.err (!%p1289_p4)
}
   0xc   :  { %s1340_s12 = smov 128   ;;  %s1341_s13 = smov 8  }
   0xd   :  { %21 = dma.hbm_to_vmem [thread:$0]  %s1376_s0, 4096, %s16_s10, [#allocation4], %s1340_s12, %s1340_s12, %s1341_s13  }
   0xe   :  { %s1342_s16 = smov [#allocation6]  }
   0xf   :  { %s27_s17 = sshll.u32 %s1342_s16, 4  ;;  %s28_s17 = int_to_ptr.vmem [resolvable:$true] %s27_s17 }
  0x10   :  { %s1301_s18 = scalar_lea.vmem %s28_s17, 2048  ;;  %p1306_p6 = scmp.lt.s32.totalorder %s28_s17, %s28_s17 }
  0x11   :  { %p1302_p5 = scmp.ne.s32.totalorder %s28_s17, %s1301_s18  ;;  %p1307_p7 = scmp.lt.s32.totalorder %s1301_s18, %s1301_s18 }
  0x13   :  { %p1308_p8 = por %p1307_p7, %p1306_p6 }
  0x15   :  { %p1309_p9 = pnand %p1308_p8, %p1302_p5 }
  0x17   :  { %1312 = shalt.err (!%p1309_p9)
}
  0x18   :  { %s1343_s19 = smov 64   ;;  %s1344_s20 = smov 4  }
  0x19   :  { %33 = dma.hbm_to_vmem [thread:$0]  %s1377_s1, 2048, %s28_s17, [#allocation7], %s1343_s19, %s1343_s19, %s1344_s20  }
  0x1a   :  { %1333 = dma.done.wait [#allocation4], 4096  }
  0x1b   :  { %1334 = vsyncadd [#allocation4], 4294963200 }
  0x1c   :  { %1335 = dma.done.wait [#allocation7], 2048  }
  0x1d   :  { %1336 = vsyncadd [#allocation7], 4294965248  ;;  %v1209_v0 = vld [vmem:[#allocation6 + $0x78] sm:$0xff]   ;;  %v1211_v2 = vld [vmem:[#allocation6 + $0x70] sm:$0xff]   ;;  %s1345_s0 = smov [#allocation8]  }
  0x1e   :  { %v1210_v1 = vld [vmem:[#allocation6 + $0x38] sm:$0xff]   ;;  %1074 = vmatprep.subr.bf16.mxu0 %v1209_v0  ;;  %1186 = vmatprep.subr.bf16.mxu1 %v1209_v0  ;;  %v1212_v3 = vld [vmem:[#allocation6 + $0x30] sm:$0xff]   ;;  %v1213_v4 = vld [vmem:[#allocation6 + $0x68] sm:$0xff]   ;;  %s854_s1 = sshll.u32 %s1345_s0, 4  ;;  %s855_s1 = int_to_ptr.vmem [resolvable:$true] %s854_s1 }
  0x1f   :  { %1075 = vmatpush3.bf16.msra.mxu0 %v1210_v1  ;;  %1194 = vmatpush3.bf16.msra.mxu1 %v1210_v1  ;;  %v1214_v5 = vld [vmem:[#allocation6 + $0x28] sm:$0xff]   ;;  %v1215_v6 = vld [vmem:[#allocation6 + $0x60] sm:$0xff]   ;;  %v1217_v8 = vld [vmem:[#allocation6 + $0x58] sm:$0xff]   ;;  %s1313_s23 = scalar_lea.vmem %s855_s1, 2048  ;;  %p1318_p11 = scmp.lt.s32.totalorder %s855_s1, %s855_s1 }
  0x20   :  { %1076 = vmatprep.subr.bf16.mxu0 %v1211_v2  ;;  %1187 = vmatprep.subr.bf16.mxu1 %v1211_v2  ;;  %v1216_v7 = vld [vmem:[#allocation6 + $0x20] sm:$0xff]   ;;  %v1218_v9 = vld [vmem:[#allocation6 + $0x18] sm:$0xff]   ;;  %v1219_v10 = vld [vmem:[#allocation6 + $0x50] sm:$0xff]   ;;  %p1314_p10 = scmp.ne.s32.totalorder %s855_s1, %s1313_s23  ;;  %p1319_p12 = scmp.lt.s32.totalorder %s1313_s23, %s1313_s23 }
  0x21   :  { %v1227_v11 = vld [vmem:[#allocation3 + $0x4] ss:$8 sps:$4 sm:$0xff]   ;;  %v1220_v13 = vld [vmem:[#allocation6 + $0x10] sm:$0xff]   ;;  %v1225_v18 = vld [vmem:[#allocation3] ss:$8 sps:$4 sm:$0xff]  }
  0x22   :  { %v1230_v12 = vld [vmem:[#allocation3 + $0x84] ss:$8 sps:$4 sm:$0xff]   ;;  %461 = vmatprep.mubr.bf16.mxu0 %v1227_v11  ;;  %v1228_v19 = vld [vmem:[#allocation3 + $0x80] ss:$8 sps:$4 sm:$0xff]   ;;  %v1231_v20 = vld [vmem:[#allocation3 + $0x14] ss:$8 sps:$4 sm:$0xff]   ;;  %p1320_p13 = por %p1319_p12, %p1318_p11 }
  0x23   :  { %1077 = vmatpush3.bf16.msra.mxu0 %v1212_v3  ;;  %1195 = vmatpush3.bf16.msra.mxu1 %v1212_v3  ;;  %v1221_v14 = vld [vmem:[#allocation6 + $0x48] sm:$0xff]   ;;  %v1223_v16 = vld [vmem:[#allocation6 + $0x40] sm:$0xff]   ;;  %v1233_v21 = vld [vmem:[#allocation3 + $0x94] ss:$8 sps:$4 sm:$0xff]  }
  0x24   :  { %1078 = vmatprep.subr.bf16.mxu0 %v1213_v4  ;;  %1188 = vmatprep.subr.bf16.mxu1 %v1213_v4  ;;  %v1222_v15 = vld [vmem:[#allocation6 + $0x8] sm:$0xff]   ;;  %v1224_v17 = vld [vmem:[#allocation6] sm:$0xff]   ;;  %v1235_v22 = vld [vmem:[#allocation3 + $0x10] ss:$8 sps:$4 sm:$0xff]   ;;  %p1321_p0 = pnand %p1320_p13, %p1314_p10 }
  0x25   :  { %525 = vmatprep.mubr.bf16.mxu1 %v1230_v12  ;;  %v1236_v23 = vld [vmem:[#allocation3 + $0x90] ss:$8 sps:$4 sm:$0xff]   ;;  %v1237_v24 = vld [vmem:[#allocation3 + $0x24] ss:$8 sps:$4 sm:$0xff]   ;;  %v1241_v26 = vld [vmem:[#allocation3 + $0x20] ss:$8 sps:$4 sm:$0xff]  }
  0x26   :  { %v1239_v25 = vld [vmem:[#allocation3 + $0xa4] ss:$8 sps:$4 sm:$0xff]   ;;  %v1242_v27 = vld [vmem:[#allocation3 + $0xa0] ss:$8 sps:$4 sm:$0xff]   ;;  %v1243_v28 = vld [vmem:[#allocation3 + $0x34] ss:$8 sps:$4 sm:$0xff]  }
  0x27   :  { %1079 = vmatpush3.bf16.msra.mxu0 %v1214_v5  ;;  %1196 = vmatpush3.bf16.msra.mxu1 %v1214_v5  ;;  %v1245_v29 = vld [vmem:[#allocation3 + $0xb4] ss:$8 sps:$4 sm:$0xff]   ;;  %v1247_v30 = vld [vmem:[#allocation3 + $0x30] ss:$8 sps:$4 sm:$0xff]   ;;  %v1249_v32 = vld [vmem:[#allocation3 + $0x44] ss:$8 sps:$4 sm:$0xff]  }
  0x28   :  { %1080 = vmatprep.subr.bf16.mxu0 %v1215_v6  ;;  %1189 = vmatprep.subr.bf16.mxu1 %v1215_v6  ;;  %v1248_v31 = vld [vmem:[#allocation3 + $0xb0] ss:$8 sps:$4 sm:$0xff]   ;;  %v1251_v33 = vld [vmem:[#allocation3 + $0xc4] ss:$8 sps:$4 sm:$0xff]   ;;  %v1253_v34 = vld [vmem:[#allocation3 + $0x40] ss:$8 sps:$4 sm:$0xff]  }
  0x29   :  { %v1254_v35 = vld [vmem:[#allocation3 + $0xc0] ss:$8 sps:$4 sm:$0xff]   ;;  %v1255_v36 = vld [vmem:[#allocation3 + $0x54] ss:$8 sps:$4 sm:$0xff]   ;;  %v1259_v38 = vld [vmem:[#allocation3 + $0x50] ss:$8 sps:$4 sm:$0xff]  }
  0x2a   :  { %v1257_v37 = vld [vmem:[#allocation3 + $0xd4] ss:$8 sps:$4 sm:$0xff]   ;;  %v1260_v39 = vld [vmem:[#allocation3 + $0xd0] ss:$8 sps:$4 sm:$0xff]   ;;  %v1261_v40 = vld [vmem:[#allocation3 + $0x64] ss:$8 sps:$4 sm:$0xff]  }
  0x2b   :  { %1081 = vmatpush3.bf16.msra.mxu0 %v1216_v7  ;;  %1197 = vmatpush3.bf16.msra.mxu1 %v1216_v7  ;;  %v1263_v41 = vld [vmem:[#allocation3 + $0xe4] ss:$8 sps:$4 sm:$0xff]   ;;  %v1265_v42 = vld [vmem:[#allocation3 + $0x60] ss:$8 sps:$4 sm:$0xff]   ;;  %v1267_v44 = vld [vmem:[#allocation3 + $0x74] ss:$8 sps:$4 sm:$0xff]  }
  0x2c   :  { %1082 = vmatprep.subr.bf16.mxu0 %v1217_v8  ;;  %1190 = vmatprep.subr.bf16.mxu1 %v1217_v8  ;;  %v1266_v43 = vld [vmem:[#allocation3 + $0xe0] ss:$8 sps:$4 sm:$0xff]   ;;  %v1269_v45 = vld [vmem:[#allocation3 + $0xf4] ss:$8 sps:$4 sm:$0xff]   ;;  %v1271_v46 = vld [vmem:[#allocation3 + $0x70] ss:$8 sps:$4 sm:$0xff]  }
  0x2d   :  { %v1272_v47 = vld [vmem:[#allocation3 + $0xf0] ss:$8 sps:$4 sm:$0xff]  }
  0x2f   :  { %1083 = vmatpush3.bf16.msra.mxu0 %v1218_v9  ;;  %1198 = vmatpush3.bf16.msra.mxu1 %v1218_v9 }
  0x30   :  { %1084 = vmatprep.subr.bf16.mxu0 %v1219_v10  ;;  %1191 = vmatprep.subr.bf16.mxu1 %v1219_v10 }
  0x33   :  { %1085 = vmatpush3.bf16.msra.mxu0 %v1220_v13  ;;  %1199 = vmatpush3.bf16.msra.mxu1 %v1220_v13 }
  0x34   :  { %1086 = vmatprep.subr.bf16.mxu0 %v1221_v14  ;;  %1192 = vmatprep.subr.bf16.mxu1 %v1221_v14 }
  0x37   :  { %1087 = vmatpush3.bf16.msra.mxu0 %v1222_v15  ;;  %1200 = vmatpush3.bf16.msra.mxu1 %v1222_v15 }
  0x38   :  { %1088 = vmatprep.subr.bf16.mxu0 %v1223_v16  ;;  %1193 = vmatprep.subr.bf16.mxu1 %v1223_v16 }
  0x3b   :  { %1089 = vmatpush3.bf16.msra.mxu0 %v1224_v17  ;;  %1201 = vmatpush3.bf16.msra.mxu1 %v1224_v17 }
  0x3e   :  { %462 = vmatmul.mubr.bf16.vlgmr.msra.gmra.mxu0 %v1225_v18  ;;  %526 = vmatmul.mubr.bf16.vlgmr.msra.gmra.mxu1 %v1228_v19 }
  0x3f   :  { %469 = vmatprep.mubr.bf16.mxu0 %v1231_v20  ;;  %533 = vmatprep.mubr.bf16.mxu1 %v1233_v21 }
  0x46   :  { %470 = vmatmul.mubr.bf16.gmra.mxu0 %v1235_v22  ;;  %534 = vmatmul.mubr.bf16.gmra.mxu1 %v1236_v23 }
  0x47   :  { %477 = vmatprep.mubr.bf16.mxu0 %v1237_v24  ;;  %541 = vmatprep.mubr.bf16.mxu1 %v1239_v25 }
  0x4e   :  { %478 = vmatmul.mubr.bf16.gmra.mxu0 %v1241_v26  ;;  %542 = vmatmul.mubr.bf16.gmra.mxu1 %v1242_v27 }
  0x4f   :  { %485 = vmatprep.mubr.bf16.mxu0 %v1243_v28  ;;  %549 = vmatprep.mubr.bf16.mxu1 %v1245_v29 }
  0x56   :  { %486 = vmatmul.mubr.bf16.gmra.mxu0 %v1247_v30  ;;  %550 = vmatmul.mubr.bf16.gmra.mxu1 %v1248_v31 }
  0x57   :  { %493 = vmatprep.mubr.bf16.mxu0 %v1249_v32  ;;  %557 = vmatprep.mubr.bf16.mxu1 %v1251_v33 }
  0x5e   :  { %494 = vmatmul.mubr.bf16.gmra.mxu0 %v1253_v34  ;;  %558 = vmatmul.mubr.bf16.gmra.mxu1 %v1254_v35 }
  0x5f   :  { %501 = vmatprep.mubr.bf16.mxu0 %v1255_v36  ;;  %565 = vmatprep.mubr.bf16.mxu1 %v1257_v37 }
  0x66   :  { %502 = vmatmul.mubr.bf16.gmra.mxu0 %v1259_v38  ;;  %566 = vmatmul.mubr.bf16.gmra.mxu1 %v1260_v39 }
  0x67   :  { %509 = vmatprep.mubr.bf16.mxu0 %v1261_v40  ;;  %573 = vmatprep.mubr.bf16.mxu1 %v1263_v41 }
  0x6e   :  { %510 = vmatmul.mubr.bf16.gmra.mxu0 %v1265_v42  ;;  %574 = vmatmul.mubr.bf16.gmra.mxu1 %v1266_v43 }
  0x6f   :  { %517 = vmatprep.mubr.bf16.mxu0 %v1267_v44  ;;  %581 = vmatprep.mubr.bf16.mxu1 %v1269_v45 }
  0x76   :  { %518 = vmatmul.mubr.bf16.gmra.mxu0 %v1271_v46  ;;  %582 = vmatmul.mubr.bf16.gmra.mxu1 %v1272_v47 }
  0xfe   :  { %v1090_v48 = vpop.f32.mrf.mxu0  ;;  %v1138_v49 = vpop.f32.mrf.mxu1 }
 0x100   :  { %v1091_v50 = vpop.f32.mrf.mxu0  ;;  %v1139_v51 = vpop.f32.mrf.mxu1 }
 0x101   :  { %v1092_v56 = vadd.f32 %v1091_v50, %v1090_v48  ;;  %v1140_v57 = vadd.f32 %v1139_v51, %v1138_v49 }
 0x102   :  { %v1093_v52 = vpop.f32.mrf.mxu0  ;;  %v1141_v53 = vpop.f32.mrf.mxu1 }
 0x104   :  { %v1094_v54 = vpop.f32.mrf.mxu0  ;;  %v1142_v55 = vpop.f32.mrf.mxu1 }
 0x105   :  { %v1095_v58 = vadd.f32 %v1094_v54, %v1093_v52  ;;  %v1143_v59 = vadd.f32 %v1142_v55, %v1141_v53 }
 0x106   :  { %v1096_v60 = vpop.f32.mrf.mxu0  ;;  %v1144_v61 = vpop.f32.mrf.mxu1 }
 0x107   :  { %v982_v62 = vpack.c.bf16 %v1095_v58, %v1092_v56  ;;  %v1022_v63 = vpack.c.bf16 %v1143_v59, %v1140_v57 }
 0x108   :  { %v1097_v0 = vpop.f32.mrf.mxu0  ;;  %v1145_v1 = vpop.f32.mrf.mxu1 }
 0x109   :  { %983 = vst [vmem:[#allocation8] sm:$0xff] %v982_v62   ;;  %1066 = vst [vmem:[#allocation8 + $0x40] sm:$0xff] %v1022_v63   ;;  %v1098_v6 = vadd.f32 %v1097_v0, %v1096_v60  ;;  %v1146_v7 = vadd.f32 %v1145_v1, %v1144_v61 }
 0x10a   :  { %v1099_v2 = vpop.f32.mrf.mxu0  ;;  %v1147_v3 = vpop.f32.mrf.mxu1 }
 0x10c   :  { %v1100_v4 = vpop.f32.mrf.mxu0  ;;  %v1148_v5 = vpop.f32.mrf.mxu1 }
 0x10d   :  { %v1101_v8 = vadd.f32 %v1100_v4, %v1099_v2  ;;  %v1149_v9 = vadd.f32 %v1148_v5, %v1147_v3 }
 0x10e   :  { %v1102_v10 = vpop.f32.mrf.mxu0  ;;  %v1150_v11 = vpop.f32.mrf.mxu1 }
 0x10f   :  { %v987_v12 = vpack.c.bf16 %v1101_v8, %v1098_v6  ;;  %v1027_v13 = vpack.c.bf16 %v1149_v9, %v1146_v7 }
 0x110   :  { %v1103_v14 = vpop.f32.mrf.mxu0  ;;  %v1151_v15 = vpop.f32.mrf.mxu1 }
 0x111   :  { %1059 = vst [vmem:[#allocation8 + $0x8] sm:$0xff] %v987_v12   ;;  %1067 = vst [vmem:[#allocation8 + $0x48] sm:$0xff] %v1027_v13   ;;  %v1104_v20 = vadd.f32 %v1103_v14, %v1102_v10  ;;  %v1152_v21 = vadd.f32 %v1151_v15, %v1150_v11 }
 0x112   :  { %v1105_v16 = vpop.f32.mrf.mxu0  ;;  %v1153_v17 = vpop.f32.mrf.mxu1 }
 0x114   :  { %v1106_v18 = vpop.f32.mrf.mxu0  ;;  %v1154_v19 = vpop.f32.mrf.mxu1 }
 0x115   :  { %v1107_v22 = vadd.f32 %v1106_v18, %v1105_v16  ;;  %v1155_v23 = vadd.f32 %v1154_v19, %v1153_v17 }
 0x116   :  { %v1108_v24 = vpop.f32.mrf.mxu0  ;;  %v1156_v25 = vpop.f32.mrf.mxu1 }
 0x117   :  { %v992_v26 = vpack.c.bf16 %v1107_v22, %v1104_v20  ;;  %v1032_v27 = vpack.c.bf16 %v1155_v23, %v1152_v21 }
 0x118   :  { %v1109_v28 = vpop.f32.mrf.mxu0  ;;  %v1157_v29 = vpop.f32.mrf.mxu1 }
 0x119   :  { %1060 = vst [vmem:[#allocation8 + $0x10] sm:$0xff] %v992_v26   ;;  %1068 = vst [vmem:[#allocation8 + $0x50] sm:$0xff] %v1032_v27   ;;  %v1110_v34 = vadd.f32 %v1109_v28, %v1108_v24  ;;  %v1158_v35 = vadd.f32 %v1157_v29, %v1156_v25 }
 0x11a   :  { %v1111_v30 = vpop.f32.mrf.mxu0  ;;  %v1159_v31 = vpop.f32.mrf.mxu1 }
 0x11c   :  { %v1112_v32 = vpop.f32.mrf.mxu0  ;;  %v1160_v33 = vpop.f32.mrf.mxu1 }
 0x11d   :  { %v1113_v36 = vadd.f32 %v1112_v32, %v1111_v30  ;;  %v1161_v37 = vadd.f32 %v1160_v33, %v1159_v31 }
 0x11e   :  { %v1114_v38 = vpop.f32.mrf.mxu0  ;;  %v1162_v39 = vpop.f32.mrf.mxu1 }
 0x11f   :  { %v997_v40 = vpack.c.bf16 %v1113_v36, %v1110_v34  ;;  %v1037_v41 = vpack.c.bf16 %v1161_v37, %v1158_v35 }
 0x120   :  { %v1115_v42 = vpop.f32.mrf.mxu0  ;;  %v1163_v43 = vpop.f32.mrf.mxu1 }
 0x121   :  { %1061 = vst [vmem:[#allocation8 + $0x18] sm:$0xff] %v997_v40   ;;  %1069 = vst [vmem:[#allocation8 + $0x58] sm:$0xff] %v1037_v41   ;;  %v1116_v48 = vadd.f32 %v1115_v42, %v1114_v38  ;;  %v1164_v49 = vadd.f32 %v1163_v43, %v1162_v39 }
 0x122   :  { %v1117_v44 = vpop.f32.mrf.mxu0  ;;  %v1165_v45 = vpop.f32.mrf.mxu1 }
 0x124   :  { %v1118_v46 = vpop.f32.mrf.mxu0  ;;  %v1166_v47 = vpop.f32.mrf.mxu1 }
 0x125   :  { %v1119_v50 = vadd.f32 %v1118_v46, %v1117_v44  ;;  %v1167_v51 = vadd.f32 %v1166_v47, %v1165_v45 }
 0x126   :  { %v1120_v52 = vpop.f32.mrf.mxu0  ;;  %v1168_v53 = vpop.f32.mrf.mxu1 }
 0x127   :  { %v1002_v54 = vpack.c.bf16 %v1119_v50, %v1116_v48  ;;  %v1042_v55 = vpack.c.bf16 %v1167_v51, %v1164_v49 }
 0x128   :  { %v1121_v56 = vpop.f32.mrf.mxu0  ;;  %v1169_v57 = vpop.f32.mrf.mxu1 }
 0x129   :  { %1062 = vst [vmem:[#allocation8 + $0x20] sm:$0xff] %v1002_v54   ;;  %1070 = vst [vmem:[#allocation8 + $0x60] sm:$0xff] %v1042_v55   ;;  %v1122_v62 = vadd.f32 %v1121_v56, %v1120_v52  ;;  %v1170_v63 = vadd.f32 %v1169_v57, %v1168_v53 }
 0x12a   :  { %v1123_v58 = vpop.f32.mrf.mxu0  ;;  %v1171_v59 = vpop.f32.mrf.mxu1 }
 0x12c   :  { %v1124_v60 = vpop.f32.mrf.mxu0  ;;  %v1172_v61 = vpop.f32.mrf.mxu1 }
 0x12d   :  { %v1125_v0 = vadd.f32 %v1124_v60, %v1123_v58  ;;  %v1173_v1 = vadd.f32 %v1172_v61, %v1171_v59 }
 0x12e   :  { %v1126_v2 = vpop.f32.mrf.mxu0  ;;  %v1174_v3 = vpop.f32.mrf.mxu1 }
 0x12f   :  { %v1007_v4 = vpack.c.bf16 %v1125_v0, %v1122_v62  ;;  %v1047_v5 = vpack.c.bf16 %v1173_v1, %v1170_v63 }
 0x130   :  { %v1127_v6 = vpop.f32.mrf.mxu0  ;;  %v1175_v7 = vpop.f32.mrf.mxu1 }
 0x131   :  { %1063 = vst [vmem:[#allocation8 + $0x28] sm:$0xff] %v1007_v4   ;;  %1071 = vst [vmem:[#allocation8 + $0x68] sm:$0xff] %v1047_v5   ;;  %v1128_v12 = vadd.f32 %v1127_v6, %v1126_v2  ;;  %v1176_v13 = vadd.f32 %v1175_v7, %v1174_v3 }
 0x132   :  { %v1129_v8 = vpop.f32.mrf.mxu0  ;;  %v1177_v9 = vpop.f32.mrf.mxu1 }
 0x134   :  { %v1130_v10 = vpop.f32.mrf.mxu0  ;;  %v1178_v11 = vpop.f32.mrf.mxu1 }
 0x135   :  { %v1131_v14 = vadd.f32 %v1130_v10, %v1129_v8  ;;  %v1179_v15 = vadd.f32 %v1178_v11, %v1177_v9 }
 0x136   :  { %v1132_v16 = vpop.f32.mrf.mxu0  ;;  %v1180_v17 = vpop.f32.mrf.mxu1 }
 0x137   :  { %v1012_v18 = vpack.c.bf16 %v1131_v14, %v1128_v12  ;;  %v1052_v19 = vpack.c.bf16 %v1179_v15, %v1176_v13 }
 0x138   :  { %v1133_v20 = vpop.f32.mrf.mxu0  ;;  %v1181_v21 = vpop.f32.mrf.mxu1 }
 0x139   :  { %1064 = vst [vmem:[#allocation8 + $0x30] sm:$0xff] %v1012_v18   ;;  %1072 = vst [vmem:[#allocation8 + $0x70] sm:$0xff] %v1052_v19   ;;  %v1134_v26 = vadd.f32 %v1133_v20, %v1132_v16  ;;  %v1182_v27 = vadd.f32 %v1181_v21, %v1180_v17 }
 0x13a   :  { %v1135_v22 = vpop.f32.mrf.mxu0  ;;  %v1183_v23 = vpop.f32.mrf.mxu1 }
 0x13c   :  { %v1136_v24 = vpop.f32.mrf.mxu0  ;;  %v1184_v25 = vpop.f32.mrf.mxu1 }
 0x13d   :  { %v1137_v28 = vadd.f32 %v1136_v24, %v1135_v22  ;;  %v1185_v29 = vadd.f32 %v1184_v25, %v1183_v23 }
 0x13f   :  { %v1017_v30 = vpack.c.bf16 %v1137_v28, %v1134_v26  ;;  %v1057_v31 = vpack.c.bf16 %v1185_v29, %v1182_v27 }
 0x141   :  { %1065 = vst [vmem:[#allocation8 + $0x38] sm:$0xff] %v1017_v30   ;;  %1073 = vst [vmem:[#allocation8 + $0x78] sm:$0xff] %v1057_v31  }
 0x142   :  { %1324 = shalt.err (!%p1321_p0)
}
 0x143   :  { %860 = dma.vmem_to_hbm [thread:$0]  %s855_s1, 2048, %s1378_s2, [#allocation5], %s1343_s19, %s1343_s19, %s1344_s20  }
 0x144   :  { %1337 = dma.done.wait [#allocation5], 2048  }
 0x145   :  { %1338 = vsyncadd [#allocation5], 4294965248 }
 0x146   :  { %864 = vsyncpa [#allocation4], 1 }
 0x147   :  { %865 = vsyncpa [#allocation7], 1 }
 0x148   :  { %866 = vsyncpa [#allocation5], 1 }

</bundles_post_ra>
